<compile_context>
chip_gen: v5e
topology: v5e:2x2
jax: 0.10.0
libtpu: 0.0.40
codegen_flags: <defaults>
</compile_context>

<pallas_src>
import jax
import jax.numpy as jnp
from jax.experimental import pallas as pl
from jax.experimental.pallas import tpu as pltpu


def _make_ccc_kernel(total_b, block_b, weight_mode, needs_mask):
    """Build kernel body.

    weight_mode: "none" | "row" ((block_b,1)) | "col" ((1,T)) | "full" ((block_b,T)).
    needs_mask:  True when block_b does not divide B (partial boundary block).
    """

    def kernel(*refs):
        if weight_mode == "none":
            gold_ref, pred_ref, out_ref = refs
            w = None
        else:
            gold_ref, pred_ref, w_ref, out_ref = refs
            w = w_ref[...].astype(jnp.float32)

        g = gold_ref[...].astype(jnp.float32)          # (block_b, T)
        p = pred_ref[...].astype(jnp.float32)
        t = g.shape[1]

        g_mean = jnp.mean(g, axis=1, keepdims=True)    # (block_b, 1)
        p_mean = jnp.mean(p, axis=1, keepdims=True)

        dg = g - g_mean                                # centered, reused for all sums
        dp = p - p_mean

        s_gp = jnp.sum(dg * dp, axis=1, keepdims=True)   # sum of elementwise cov
        s_gg = jnp.sum(dg * dg, axis=1, keepdims=True)
        s_pp = jnp.sum(dp * dp, axis=1, keepdims=True)

        mean_diff = g_mean - p_mean
        denom = (s_gg + s_pp) / (t - 1) + mean_diff * mean_diff + 1e-8  # (block_b,1)
        # Per-row reciprocal instead of block_b*T divides.
        inv = pl.reciprocal(denom, approx=False)

        # Algebraic factoring of the per-row loss sum:
        #   sum_T (1 - 2*cov*inv)        = T       - 2*inv*sum_T(dg*dp)
        #   sum_T (w*(1 - 2*cov*inv))    = sum_T(w) - 2*inv*sum_T(w*dg*dp)
        if weight_mode == "none":
            row_loss = t - 2.0 * inv * s_gp
        elif weight_mode == "row":
            row_loss = w * (t - 2.0 * inv * s_gp)
        else:  # "col" (1,T) or "full" (block_b,T)
            w_sum = jnp.sum(w, axis=1, keepdims=True)
            sw_gp = jnp.sum(w * dg * dp, axis=1, keepdims=True)
            row_loss = w_sum - 2.0 * inv * sw_gp

        if needs_mask:
            row0 = pl.program_id(0) * block_b
            rid = row0 + jax.lax.broadcasted_iota(jnp.int32, (block_b, 1), 0)
            # Select (not multiply), so garbage NaN/Inf in OOB rows cannot escape.
            row_loss = jnp.where(rid < total_b, row_loss, 0.0)

        partial = jnp.sum(row_loss).astype(jnp.float32)
        # Lane-dense, unmasked store of this block's partial sum.
        out_ref[...] = jnp.broadcast_to(partial, (1, 8, 128))

    return kernel


def _choose_block_b(B, T, itemsize):
    # ~4 MiB of *input dtype* bytes per input per pipeline buffer:
    # 2 inputs x 2 buffers x 4 MiB = 16 MiB of DMA buffers + f32 temporaries
    # stays under the 48 MiB vmem_limit we request (v7x physical is 64 MiB;
    # v5e/v6e have 128 MiB).
    max_block_bytes = 4 << 20
    rows_budget = max(1, max_block_bytes // max(T * itemsize, 1))
    mult = 16 if itemsize < 4 else 8          # sublane packing for bf16 / f32
    if B <= mult:
        return B                              # single block == full batch dim
    # At least 2 blocks so dimension_semantics=("parallel",) can shard the
    # grid across v7x's two TensorCores.
    num_blocks = max(2, pl.cdiv(B, rows_budget))
    block_b = pl.cdiv(B, num_blocks)
    block_b = ((block_b + mult - 1) // mult) * mult
    # TODO(synk): for very long T (rows_budget < mult) the full-T block can
    # still exceed the v7x VMEM cap; a T-tiled streaming-statistics variant
    # would remove that ceiling.
    return block_b


def ccc_loss(gold, pred, weights=None, *, block_b=None):
    """Pallas TPU implementation of CCCLoss.forward.

    gold, pred: (B, T) arrays (f32 or bf16).  Reductions are over axis 1.
    weights: optional scalar, (B,), (B,1), (T,), (1,T) or (B,T) multiplier.
    Returns a scalar float32 loss = mean over all (B, T) elements.
    """
    assert gold.shape == pred.shape and gold.ndim == 2
    B, T = gold.shape
    itemsize = jnp.dtype(gold.dtype).itemsize

    if block_b is None:
        block_b = _choose_block_b(B, T, itemsize)
    block_b = min(block_b, B)
    num_blocks = pl.cdiv(B, block_b)
    needs_mask = num_blocks * block_b != B    # no jnp.pad: boundary block is masked in-kernel

    in_arrays = [gold, pred]
    in_specs = [
        pl.BlockSpec((block_b, T), lambda i: (i, 0)),
        pl.BlockSpec((block_b, T), lambda i: (i, 0)),
    ]

    # Pass weights at native shape; scalars are folded into the final division.
    weight_mode = "none"
    scale = None
    if weights is not None:
        w = jnp.asarray(weights)
        if w.ndim == 0 or w.size == 1:
            scale = w.reshape(()).astype(jnp.float32)           # no kernel operand
        elif w.ndim == 1 and w.shape[0] == B and B != T:
            in_arrays.append(w.reshape(B, 1))
            in_specs.append(pl.BlockSpec((block_b, 1), lambda i: (i, 0)))
            weight_mode = "row"
        elif w.ndim == 1 and w.shape[0] == T:
            in_arrays.append(w.reshape(1, T))
            in_specs.append(pl.BlockSpec((1, T), lambda i: (0, 0)))
            weight_mode = "col"
        elif w.shape == (B, 1):
            in_arrays.append(w)
            in_specs.append(pl.BlockSpec((block_b, 1), lambda i: (i, 0)))
            weight_mode = "row"
        elif w.shape == (1, T):
            in_arrays.append(w)
            in_specs.append(pl.BlockSpec((1, T), lambda i: (0, 0)))
            weight_mode = "col"
        else:
            in_arrays.append(jnp.broadcast_to(w, (B, T)))
            in_specs.append(pl.BlockSpec((block_b, T), lambda i: (i, 0)))
            weight_mode = "full"

    out_shape = jax.ShapeDtypeStruct((num_blocks, 8, 128), jnp.float32)
    out_spec = pl.BlockSpec((1, 8, 128), lambda i: (i, 0, 0))

    bytes_in = sum(int(x.size) * jnp.dtype(x.dtype).itemsize for x in in_arrays)
    cost = pl.CostEstimate(
        flops=9 * B * T,                      # subs, muls, reduction adds
        transcendentals=0,                    # exact per-row reciprocal (divide)
        bytes_accessed=bytes_in + num_blocks * 8 * 128 * 4,
    )

    kernel = _make_ccc_kernel(B, block_b, weight_mode, needs_mask)

    partials = pl.pallas_call(
        kernel,
        grid=(num_blocks,),
        in_specs=in_specs,
        out_specs=out_spec,
        out_shape=out_shape,
        compiler_params=pltpu.CompilerParams(
            dimension_semantics=("parallel",),
            vmem_limit_bytes=48 * 1024 * 1024,   # above v5e's 16 MiB scoped default,
                                                 # under v7x's 64 MiB physical VMEM
        ),
        cost_estimate=cost,
    )(*in_arrays)

    # Final tiny reduction over one scalar per block; torch .mean() divides by B*T.
    result = jnp.sum(partials[:, 0, 0]) / (B * T)
    if scale is not None:
        result = result * scale
    return result


def _ccc_loss_ref(gold, pred, weights=None):
    """Pure-JAX reference matching the PyTorch module."""
    gold = gold.astype(jnp.float32)
    pred = pred.astype(jnp.float32)
    t = gold.shape[1]
    g_mean = jnp.mean(gold, axis=1, keepdims=True)
    p_mean = jnp.mean(pred, axis=1, keepdims=True)
    cov = (gold - g_mean) * (pred - p_mean)
    g_var = jnp.sum((gold - g_mean) ** 2, axis=1, keepdims=True) / (t - 1)
    p_var = jnp.sum((pred - p_mean) ** 2, axis=1, keepdims=True) / (t - 1)
    ccc = 2.0 * cov / (g_var + p_var + (g_mean - p_mean) ** 2 + 1e-8)
    loss = 1.0 - ccc
    if weights is not None:
        w = jnp.asarray(weights, jnp.float32)
        if w.ndim == 1 and w.shape[0] == gold.shape[0] and gold.shape[0] != gold.shape[1]:
            w = w[:, None]                      # per-row convenience form
        loss = loss * w
    return jnp.mean(loss)


if __name__ == "__main__":
    # CCCLoss has no learnable parameters; only inputs are built.
    key = jax.random.PRNGKey(0)
    k1, k2, k3, k4, k5, k6 = jax.random.split(key, 6)

    # Test 1: unweighted, f32, single block (B=8, T=128).
    B, T = 8, 128
    gold = jax.random.normal(k1, (B, T), dtype=jnp.float32)
    pred = jax.random.normal(k2, (B, T), dtype=jnp.float32)
    out = ccc_loss(gold, pred)
    jax.block_until_ready(out)
    ref = _ccc_loss_ref(gold, pred)
    assert jnp.allclose(out, ref, atol=1e-4, rtol=1e-4), (out, ref)

    # Test 2: per-row weights, gridded over B with a masked (un-padded)
    # boundary block (B=24, block_b=16 -> 2 blocks).
    B2, T2 = 24, 256
    gold2 = jax.random.normal(k3, (B2, T2), dtype=jnp.float32)
    pred2 = jax.random.normal(k4, (B2, T2), dtype=jnp.float32)
    w2 = jax.random.uniform(k5, (B2,), dtype=jnp.float32)
    out2 = ccc_loss(gold2, pred2, weights=w2, block_b=16)
    jax.block_until_ready(out2)
    ref2 = _ccc_loss_ref(gold2, pred2, w2)
    assert jnp.allclose(out2, ref2, atol=1e-4, rtol=1e-4), (out2, ref2)

    # Test 3: bf16 inputs (halved HBM traffic), f32 math inside the kernel.
    gold3 = gold.astype(jnp.bfloat16)
    pred3 = pred.astype(jnp.bfloat16)
    out3 = ccc_loss(gold3, pred3)
    jax.block_until_ready(out3)
    ref3 = _ccc_loss_ref(gold3, pred3)
    assert jnp.allclose(out3, ref3, atol=1e-4, rtol=1e-4), (out3, ref3)

    # Test 4: per-column (T,) weights, auto block choice (2 blocks, masked boundary).
    w4 = jax.random.uniform(k6, (T2,), dtype=jnp.float32)
    out4 = ccc_loss(gold2, pred2, weights=w4)
    jax.block_until_ready(out4)
    ref4 = _ccc_loss_ref(gold2, pred2, w4)
    assert jnp.allclose(out4, ref4, atol=1e-4, rtol=1e-4), (out4, ref4)

    # Test 5: scalar weight folded into the wrapper's final division.
    out5 = ccc_loss(gold, pred, weights=jnp.float32(0.5))
    jax.block_until_ready(out5)
    ref5 = _ccc_loss_ref(gold, pred, jnp.float32(0.5))
    assert jnp.allclose(out5, ref5, atol=1e-4, rtol=1e-4), (out5, ref5)

    print("KERNEL_OK")
</pallas_src>

<mosaic_0001>
module attributes {stable_mosaic.version = 11 : i64} {
  func.func @kernel(%arg0: i32, %arg1: memref<8x128xf32, #tpu.memory_space<vmem>>, %arg2: memref<8x128xf32, #tpu.memory_space<vmem>>, %arg3: memref<1x8x128xf32, #tpu.memory_space<vmem>>) attributes {dimension_semantics = [#tpu.dimension_semantics<parallel>], iteration_bounds = array<i64: 1>, scalar_prefetch = 0 : i64, scratch_operands = 0 : i64, tpu.core_type = #tpu.core_type<tc>, window_params = [{transform_indices = @transform_0, window_bounds = array<i64: 8, 128>}, {transform_indices = @transform_1, window_bounds = array<i64: 8, 128>}, {transform_indices = @transform_2, window_bounds = array<i64: 1, 8, 128>}]} {
    %c0 = arith.constant 0 : index
    %c0_0 = arith.constant 0 : index
    %0 = vector.load %arg1[%c0, %c0_0] : memref<8x128xf32, #tpu.memory_space<vmem>>, vector<8x128xf32>
    %c0_1 = arith.constant 0 : index
    %c0_2 = arith.constant 0 : index
    %1 = vector.load %arg2[%c0_1, %c0_2] : memref<8x128xf32, #tpu.memory_space<vmem>>, vector<8x128xf32>
    %cst = arith.constant dense<0.000000e+00> : vector<8xf32>
    %2 = vector.multi_reduction <add>, %0, %cst [1] : vector<8x128xf32> to vector<8xf32>
    %3 = vector.shape_cast %2 : vector<8xf32> to vector<8x1xf32>
    %cst_3 = arith.constant 1.280000e+02 : f32
    %4 = vector.broadcast %cst_3 : f32 to vector<8x1xf32>
    %5 = arith.divf %3, %4 : vector<8x1xf32>
    %cst_4 = arith.constant dense<0.000000e+00> : vector<8xf32>
    %6 = vector.multi_reduction <add>, %1, %cst_4 [1] : vector<8x128xf32> to vector<8xf32>
    %7 = vector.shape_cast %6 : vector<8xf32> to vector<8x1xf32>
    %cst_5 = arith.constant 1.280000e+02 : f32
    %8 = vector.broadcast %cst_5 : f32 to vector<8x1xf32>
    %9 = arith.divf %7, %8 : vector<8x1xf32>
    %10 = vector.broadcast %5 : vector<8x1xf32> to vector<8x128xf32>
    %11 = arith.subf %0, %10 : vector<8x128xf32>
    %12 = vector.broadcast %9 : vector<8x1xf32> to vector<8x128xf32>
    %13 = arith.subf %1, %12 : vector<8x128xf32>
    %14 = arith.mulf %11, %13 : vector<8x128xf32>
    %cst_6 = arith.constant dense<0.000000e+00> : vector<8xf32>
    %15 = vector.multi_reduction <add>, %14, %cst_6 [1] : vector<8x128xf32> to vector<8xf32>
    %16 = vector.shape_cast %15 : vector<8xf32> to vector<8x1xf32>
    %17 = arith.mulf %11, %11 : vector<8x128xf32>
    %cst_7 = arith.constant dense<0.000000e+00> : vector<8xf32>
    %18 = vector.multi_reduction <add>, %17, %cst_7 [1] : vector<8x128xf32> to vector<8xf32>
    %19 = vector.shape_cast %18 : vector<8xf32> to vector<8x1xf32>
    %20 = arith.mulf %13, %13 : vector<8x128xf32>
    %cst_8 = arith.constant dense<0.000000e+00> : vector<8xf32>
    %21 = vector.multi_reduction <add>, %20, %cst_8 [1] : vector<8x128xf32> to vector<8xf32>
    %22 = vector.shape_cast %21 : vector<8xf32> to vector<8x1xf32>
    %23 = arith.subf %5, %9 : vector<8x1xf32>
    %24 = arith.addf %19, %22 : vector<8x1xf32>
    %cst_9 = arith.constant 1.270000e+02 : f32
    %25 = vector.broadcast %cst_9 : f32 to vector<8x1xf32>
    %26 = arith.divf %24, %25 : vector<8x1xf32>
    %27 = arith.mulf %23, %23 : vector<8x1xf32>
    %28 = arith.addf %26, %27 : vector<8x1xf32>
    %cst_10 = arith.constant 9.99999993E-9 : f32
    %29 = vector.broadcast %cst_10 : f32 to vector<8x1xf32>
    %30 = arith.addf %28, %29 : vector<8x1xf32>
    %31 = tpu.reciprocal %30 : vector<8x1xf32> -> vector<8x1xf32>
    %cst_11 = arith.constant 2.000000e+00 : f32
    %32 = vector.broadcast %cst_11 : f32 to vector<8x1xf32>
    %33 = arith.mulf %32, %31 : vector<8x1xf32>
    %34 = arith.mulf %33, %16 : vector<8x1xf32>
    %cst_12 = arith.constant 1.280000e+02 : f32
    %35 = vector.broadcast %cst_12 : f32 to vector<8x1xf32>
    %36 = arith.subf %35, %34 : vector<8x1xf32>
    %37 = vector.shape_cast %36 : vector<8x1xf32> to vector<1x8x1xf32>
    %cst_13 = arith.constant dense<0.000000e+00> : vector<1xf32>
    %38 = vector.multi_reduction <add>, %37, %cst_13 [1, 2] : vector<1x8x1xf32> to vector<1xf32>
    %39 = vector.shape_cast %38 : vector<1xf32> to vector<1x1x1xf32>
    %40 = vector.extract %39[0, 0, 0] : f32 from vector<1x1x1xf32>
    %41 = vector.broadcast %40 : f32 to vector<1x8x128xf32>
    %c0_14 = arith.constant 0 : index
    %c0_15 = arith.constant 0 : index
    %c0_16 = arith.constant 0 : index
    %42 = vector.load %arg3[%c0_14, %c0_15, %c0_16] : memref<1x8x128xf32, #tpu.memory_space<vmem>>, vector<1x8x128xf32>
    tpu.vector_store %arg3[%c0_14, %c0_15, %c0_16], %41 {strides = array<i32>} : memref<1x8x128xf32, #tpu.memory_space<vmem>>, vector<1x8x128xf32>,
    return
  }
  func.func @transform_0(%arg0: i32) -> (i32, i32) {
    %c0_i32 = arith.constant 0 : i32
    %c0_i32_0 = arith.constant 0 : i32
    return %arg0, %c0_i32 : i32, i32
  }
  func.func @transform_1(%arg0: i32) -> (i32, i32) {
    %c0_i32 = arith.constant 0 : i32
    %c0_i32_0 = arith.constant 0 : i32
    return %arg0, %c0_i32 : i32, i32
  }
  func.func @transform_2(%arg0: i32) -> (i32, i32, i32) {
    %c0_i32 = arith.constant 0 : i32
    %c0_i32_0 = arith.constant 0 : i32
    %c0_i32_1 = arith.constant 0 : i32
    return %arg0, %c0_i32, %c0_i32_0 : i32, i32, i32
  }
}

</mosaic_0001>

<bundles_post_ra>
// kernel: tpu_custom_call.1
= control target key start
LH: loop header
LB: loop body
LE: loop exit
PB: predicated region body
PF: predicated region fallthrough
CT: control target
= control target key end

     0   :  { %7 = vsyncpa [#allocation3], 0  ;;  %s247_s0 = inlined_call_operand.hbm [shape: f32[8,128], index: 0, kind: input, shape index: {}]   ;;  %s248_s1 = inlined_call_operand.hbm [shape: f32[8,128], index: 1, kind: input, shape index: {}]   ;;  %s249_s2 = inlined_call_operand.hbm [shape: f32[1,8,128], index: 2, kind: output, shape index: {}]  }
   0x1   :  { %8 = vsyncpa [#allocation6], 0 }
   0x2   :  { %9 = vsyncpa [#allocation4], 0  ;;  %s15_s11 = sshll.u32 %s247_s0, 4  ;;  %s218_s12 = smov [#allocation2]   ;;  %s16_s11 = int_to_ptr.hbm [resolvable:$true] %s15_s11 }
   0x3   :  { %s17_s13 = sshll.u32 %s218_s12, 4  ;;  %s26_s16 = sshll.u32 %s248_s1, 4  ;;  %s18_s13 = int_to_ptr.vmem [resolvable:$true] %s17_s13  ;;  %s27_s16 = int_to_ptr.hbm [resolvable:$true] %s26_s16 }
   0x4   :  { %20 = dma.hbm_to_vmem [thread:$0]  %s16_s11, 128, %s18_s13, [#allocation3]  }
   0x5   :  { %s219_s17 = smov [#allocation5]  }
   0x6   :  { %s28_s18 = sshll.u32 %s219_s17, 4  ;;  %s29_s18 = int_to_ptr.vmem [resolvable:$true] %s28_s18 }
   0x7   :  { %31 = dma.hbm_to_vmem [thread:$0]  %s27_s16, 128, %s29_s18, [#allocation6]  }
   0x8   :  { %212 = dma.done.wait [#allocation3], 128  }
   0x9   :  { %213 = vsyncadd [#allocation3], 4294967168 }
   0xa   :  { %214 = dma.done.wait [#allocation6], 128  }
   0xb   :  { %215 = vsyncadd [#allocation6], 4294967168  ;;  %v40_v0 = vld [vmem:[#allocation2] sm:$0xff]  ;;  %v41_v1 = vld [vmem:[#allocation5] sm:$0xff]  ;;  %v220_v2 = vmov 128.0   ;;  %v221_v19 = vmov 127.0  }
   0xc   :  { %42 = vadd.xlane.f32.xlu0 %v40_v0  ;;  %134 = vrcp.f32 %v220_v2  ;;  %vm96_vm6 = vcmask 7168   ;;  %s222_s0 = smov [#allocation7]   ;;  %s116_s21 = sshll.u32 %s249_s2, 4  ;;  %s117_s21 = int_to_ptr.hbm [resolvable:$true] %s116_s21 }
   0xd   :  { %136 = vrcp.f32 %v221_v19  ;;  %s114_s1 = sshll.u32 %s222_s0, 4  ;;  %s115_s1 = int_to_ptr.vmem [resolvable:$true] %s114_s1 }
  0x12   :  { %v135_v3 = vpop.eup %134 }
  0x13   :  { %v45_v4 = vmul.f32 128.0, %v135_v3  ;;  %vm49_vm0 = vweird.f32 %v135_v3  ;;  %v137_v20 = vpop.eup %136 }
  0x14   :  { %52 = vadd.xlane.f32.xlu0 %v41_v1  ;;  %v69_v21 = vmul.f32 127.0, %v137_v20  ;;  %vm73_vm1 = vweird.f32 %v137_v20 }
  0x15   :  { %v46_v5 = vsub.f32 1.0, %v45_v4 }
  0x16   :  { %v70_v22 = vsub.f32 1.0, %v69_v21 }
  0x17   :  { %v47_v6 = vmul.f32 %v135_v3, %v46_v5 }
  0x18   :  { %v71_v24 = vmul.f32 %v137_v20, %v70_v22 }
  0x19   :  { %v48_v7 = vadd.f32 %v135_v3, %v47_v6 }
  0x1a   :  { %v72_v25 = vadd.f32 %v137_v20, %v71_v24 }
  0x1b   :  { %v50_v8 = vsel %vm49_vm0, %v135_v3, %v48_v7 }
  0x1c   :  { %v74_v26 = vsel %vm73_vm1, %v137_v20, %v72_v25 }
  0x7f   :  { %v43_v9 = vpop.xlane.xlu0 %42 }
  0x80   :  { %v51_v10 = vmul.f32 %v50_v8, %v43_v9 }
  0x82   :  { %v55_v11 = vsub.f32 %v40_v0, %v51_v10 }
  0x84   :  { %v60_v12 = vmul.f32 %v55_v11, %v55_v11 }
  0x86   :  { %61 = vadd.xlane.f32.xlu1 %v60_v12 }
  0x87   :  { %v53_v13 = vpop.xlane.xlu0 %52 }
  0x88   :  { %v54_v14 = vmul.f32 %v53_v13, %v50_v8 }
  0x8a   :  { %v56_v15 = vsub.f32 %v41_v1, %v54_v14  ;;  %v66_v16 = vsub.f32 %v51_v10, %v54_v14 }
  0x8c   :  { %v63_v17 = vmul.f32 %v56_v15, %v56_v15  ;;  %v57_v18 = vmul.f32 %v56_v15, %v55_v11  ;;  %v76_v29 = vmul.f32 %v66_v16, %v66_v16 }
  0x8e   :  { %64 = vadd.xlane.f32.xlu1 %v63_v17  ;;  %58 = vadd.xlane.f32.xlu2 %v57_v18 }
  0xf9   :  { %v62_v23 = vpop.xlane.xlu1 %61 }
 0x101   :  { %v65_v27 = vpop.xlane.xlu1 %64  ;;  %v59_v44 = vpop.xlane.xlu2 %58 }
 0x102   :  { %v67_v28 = vadd.f32 %v65_v27, %v62_v23 }
 0x104   :  { %v75_v30 = vmul.f32 %v74_v26, %v67_v28 }
 0x106   :  { %v77_v31 = vadd.f32 %v76_v29, %v75_v30 }
 0x108   :  { %v78_v32 = vadd.f32 1e-08, %v77_v31 }
 0x10a   :  { %138 = vrcp.f32 %v78_v32  ;;  %v90_v36 = vand.u32 2147483648, %v78_v32  ;;  %v88_v38 = vand.u32 2147483647, %v78_v32  ;;  %vm84_vm3 = vweird.f32 %v78_v32 }
 0x10c   :  { %v91_v40 = vor.u32 1.1754944e-38, %v90_v36  ;;  %vm89_vm5 = vcmp.eq.f32.partialorder %v88_v38, 8.507059e+37 }
 0x110   :  { %v139_v33 = vpop.eup %138 }
 0x111   :  { %v80_v34 = vmul.f32 %v139_v33, %v78_v32  ;;  %vm85_vm2 = vweird.f32 %v139_v33 }
 0x112   :  { %vm86_vm4 = vmor %vm84_vm3, %vm85_vm2 }
 0x113   :  { %v81_v35 = vsub.f32 1.0, %v80_v34 }
 0x115   :  { %v82_v37 = vmul.f32 %v139_v33, %v81_v35 }
 0x117   :  { %v83_v39 = vadd.f32 %v139_v33, %v82_v37 }
 0x119   :  { %v87_v41 = vsel %vm86_vm4, %v139_v33, %v83_v39 }
 0x11a   :  { %v92_v42 = vsel %vm89_vm5, %v91_v40, %v87_v41 }
 0x11b   :  { %v93_v43 = vmul.f32 2.0, %v92_v42 }
 0x11d   :  { %v94_v45 = vmul.f32 %v93_v43, %v59_v44 }
 0x11f   :  { %v95_v46 = vsub.f32 128.0, %v94_v45 }
 0x121   :  { %v97_v47 = vsel %vm96_vm6, %v95_v46, 0.0 }
 0x122   :  { %98 = vadd.xlane.f32.xlu2 %v97_v47 }
 0x195   :  { %v99_v48 = vpop.xlane.xlu2 %98 }
 0x196   :  { %v100_v49 = vrot.slane %v99_v48, 4 }
 0x198   :  { %v101_v50 = vadd.f32 %v100_v49, %v99_v48 }
 0x19a   :  { %v102_v51 = vrot.slane %v101_v50, 2 }
 0x19c   :  { %v103_v52 = vadd.f32 %v102_v51, %v101_v50 }
 0x19e   :  { %v104_v53 = vrot.slane %v103_v52, 1 }
 0x1a0   :  { %v105_v54 = vadd.f32 %v104_v53, %v103_v52 }
 0x1a2   :  { %127 = vpush %v105_v54 }
 0x1d3   :  { %s128_s22 = spop %127 }
 0x1d4   :  { %v107_v55 = vstv %s128_s22 }
 0x1d5   :  { %108 = vst [vmem:[#allocation7] sm:$0xff] %v107_v55 }
 0x1d6   :  { %119 = dma.vmem_to_hbm [thread:$0]  %s115_s1, 128, %s117_s21, [#allocation4]  }
 0x1d7   :  { %216 = dma.done.wait [#allocation4], 128  }
 0x1d8   :  { %217 = vsyncadd [#allocation4], 4294967168 }
 0x1d9   :  { %124 = vsyncpa [#allocation3], 1 }
 0x1da   :  { %125 = vsyncpa [#allocation6], 1 }
 0x1db   :  { %126 = vsyncpa [#allocation4], 1 }

</bundles_post_ra>
